<compile_context>
chip_gen: v6e
topology: v6e:2x2x1
jax: 0.10.0
libtpu: 0.0.40
codegen_flags: <defaults>
</compile_context>

<pallas_src>
import functools

import jax
import jax.numpy as jnp
from jax.experimental import pallas as pl
from jax.experimental.pallas import tpu as pltpu


def _aggregator_kernel(a_in_ref, a_out_ref, ego_k_ref, ego_rows_ref, w_ref,
                       out_ref, acc_ref, *, d):
    """Grid = (row tiles, K blocks of the contraction axis N).

    a_in_ref / a_out_ref : (tile_n, tile_k)  adjacency slab
    ego_k_ref            : (tile_k, D)       ego rows for this K slab
    ego_rows_ref         : (tile_n, D)       ego rows of this output tile
    w_ref                : (3D, Dout_pad)    full (padded) MLP weight, f32
    out_ref              : (tile_n, Dout_pad)
    acc_ref              : (tile_n, Dout_pad) f32 accumulator scratch
    """
    k = pl.program_id(1)

    # Init: self (ego) term, computed once per row tile.
    @pl.when(k == 0)
    def _():
        acc_ref[...] = jnp.dot(ego_rows_ref[...], w_ref[0:d, :],
                               preferred_element_type=jnp.float32)

    # Partial neighbour aggregation over this K slab (MXU, f32 accumulation).
    h_in = jnp.dot(a_in_ref[...], ego_k_ref[...],
                   preferred_element_type=jnp.float32)       # (tile_n, D)
    h_out = jnp.dot(a_out_ref[...], ego_k_ref[...],
                    preferred_element_type=jnp.float32)      # (tile_n, D)

    # Fused "concat + linear" contribution of this K slab.
    acc_ref[...] += (jnp.dot(h_in, w_ref[d:2 * d, :],
                             preferred_element_type=jnp.float32)
                     + jnp.dot(h_out, w_ref[2 * d:3 * d, :],
                               preferred_element_type=jnp.float32))

    # Finalize: LeakyReLU (PyTorch default negative_slope = 0.01) in f32.
    @pl.when(k == pl.num_programs(1) - 1)
    def _():
        z = acc_ref[...]
        out_ref[...] = jnp.where(z >= 0, z, 0.01 * z).astype(out_ref.dtype)


def _pick_row_tile(n):
    if n <= 256:
        return n                       # single (or full-height) row slab
    for t in (256, 128, 64, 32, 16, 8):
        if n % t == 0:
            return t
    return n                           # fallback: full dim (always legal)


def _pick_k_tile(n):
    if n % 128 != 0:
        return n                       # K block must be mult of 128 or full dim
    for t in (1024, 512, 256, 128):
        if n % t == 0:
            return t
    return n


def aggregator_forward(neighbor_in, neighbor_out, ego_embed, mlp_weight,
                       *, compute_dtype=None, tile_n=None, tile_k=None):
    N, D = ego_embed.shape
    assert neighbor_in.shape == (N, N) and neighbor_out.shape == (N, N)
    assert mlp_weight.shape[0] == 3 * D
    Dout = mlp_weight.shape[1]
    out_dtype = ego_embed.dtype

    # Optional narrow streaming dtype for the HBM-bound operands (adjacency
    # dominates traffic).  Accumulation / epilogue remain f32 in the kernel.
    if compute_dtype is not None:
        neighbor_in = neighbor_in.astype(compute_dtype)
        neighbor_out = neighbor_out.astype(compute_dtype)
        ego_embed = ego_embed.astype(compute_dtype)

    # Lane-dense output: pad Dout to a multiple of 128 with zero weight
    # columns; slice the padding off after the call.  Weight stays f32.
    Dout_pad = ((Dout + 127) // 128) * 128
    w = mlp_weight.astype(jnp.float32)
    if Dout_pad != Dout:
        w = jnp.pad(w, ((0, 0), (0, Dout_pad - Dout)))

    if tile_n is None:
        tile_n = _pick_row_tile(N)
    if tile_k is None:
        tile_k = _pick_k_tile(N)
    assert N % tile_n == 0 and N % tile_k == 0
    n_rows, n_k = N // tile_n, N // tile_k

    # VMEM budget (double-buffered inputs/outputs + accumulator scratch);
    # set an explicit scoped limit so big tiles survive the v5e 16 MiB default
    # while staying well under v7x's 64 MiB physical VMEM.
    in_bytes = jnp.dtype(neighbor_in.dtype).itemsize
    out_bytes = jnp.dtype(out_dtype).itemsize
    est = (2 * 2 * tile_n * tile_k * in_bytes        # A_in + A_out slabs
           + 2 * tile_k * D * in_bytes               # ego K slab
           + 2 * tile_n * D * in_bytes               # ego row slab
           + 2 * 3 * D * Dout_pad * 4                # weight (grid-invariant)
           + 2 * tile_n * Dout_pad * out_bytes       # output tile
           + tile_n * Dout_pad * 4)                  # f32 accumulator
    vmem_limit = int(min(max(2 * est, 16 << 20), 48 << 20))

    kernel = functools.partial(_aggregator_kernel, d=D)

    out_padded = pl.pallas_call(
        kernel,
        out_shape=jax.ShapeDtypeStruct((N, Dout_pad), out_dtype),
        grid_spec=pltpu.PrefetchScalarGridSpec(
            num_scalar_prefetch=0,
            grid=(n_rows, n_k),
            in_specs=[
                pl.BlockSpec((tile_n, tile_k), lambda i, k: (i, k)),   # A_in
                pl.BlockSpec((tile_n, tile_k), lambda i, k: (i, k)),   # A_out
                pl.BlockSpec((tile_k, D), lambda i, k: (k, 0)),        # ego (K slab)
                pl.BlockSpec((tile_n, D), lambda i, k: (i, 0)),        # ego (rows)
                pl.BlockSpec((3 * D, Dout_pad), lambda i, k: (0, 0)),  # MLP weight
            ],
            out_specs=pl.BlockSpec((tile_n, Dout_pad), lambda i, k: (i, 0)),
            scratch_shapes=[pltpu.VMEM((tile_n, Dout_pad), jnp.float32)],
        ),
        compiler_params=pltpu.CompilerParams(
            dimension_semantics=("parallel", "arbitrary"),
            vmem_limit_bytes=vmem_limit),
    )(neighbor_in, neighbor_out, ego_embed, ego_embed, w)

    return out_padded[:, :Dout] if Dout_pad != Dout else out_padded


def aggregator_reference(neighbor_in, neighbor_out, ego_embed, mlp_weight):
    h_in = neighbor_in @ ego_embed
    h_out = neighbor_out @ ego_embed
    embed = jnp.concatenate([ego_embed, h_in, h_out], axis=1)
    z = embed @ mlp_weight
    return jnp.where(z >= 0, z, 0.01 * z)


if __name__ == "__main__":
    key = jax.random.PRNGKey(0)
    k1, k2, k3, k4 = jax.random.split(key, 4)

    # Case 1: small shapes consistent with the module (single grid step).
    N, in_dim, out_dim = 32, 16, 32
    neighbor_in = jax.random.normal(k1, (N, N), dtype=jnp.float32)
    neighbor_out = jax.random.normal(k2, (N, N), dtype=jnp.float32)
    ego_embed = jax.random.normal(k3, (N, in_dim), dtype=jnp.float32)
    mlp_weight = jax.random.normal(k4, (3 * in_dim, out_dim), dtype=jnp.float32)

    out = jax.block_until_ready(
        aggregator_forward(neighbor_in, neighbor_out, ego_embed, mlp_weight))
    ref = aggregator_reference(neighbor_in, neighbor_out, ego_embed, mlp_weight)
    assert out.shape == (N, out_dim)
    assert jnp.allclose(out, ref, atol=1e-4, rtol=1e-4), "f32 mismatch"

    # Case 2: exercise both grid axes (row tiling + K-blocked accumulation).
    N2 = 256
    k5, k6, k7 = jax.random.split(k4, 3)
    a_in2 = jax.random.normal(k5, (N2, N2), dtype=jnp.float32)
    a_out2 = jax.random.normal(k6, (N2, N2), dtype=jnp.float32)
    ego2 = jax.random.normal(k7, (N2, in_dim), dtype=jnp.float32)
    out2 = jax.block_until_ready(
        aggregator_forward(a_in2, a_out2, ego2, mlp_weight,
                           tile_n=128, tile_k=128))
    ref2 = aggregator_reference(a_in2, a_out2, ego2, mlp_weight)
    assert jnp.allclose(out2, ref2, atol=5e-2, rtol=1e-2), "K-blocked mismatch"

    # Case 3: bf16-streamed operands, f32 accumulation (looser tolerance).
    out_bf = jax.block_until_ready(
        aggregator_forward(neighbor_in, neighbor_out, ego_embed, mlp_weight,
                           compute_dtype=jnp.bfloat16))
    rel_err = jnp.max(jnp.abs(out_bf - ref)) / (jnp.max(jnp.abs(ref)) + 1e-6)
    assert rel_err < 0.05, f"bf16 relative error too large: {rel_err}"

    print("KERNEL_OK")
</pallas_src>

<mosaic_0001>
module attributes {stable_mosaic.version = 11 : i64} {
  func.func @_aggregator_kernel(%arg0: i32, %arg1: i32, %arg2: memref<32x32xf32, #tpu.memory_space<vmem>>, %arg3: memref<32x32xf32, #tpu.memory_space<vmem>>, %arg4: memref<32x16xf32, #tpu.memory_space<vmem>>, %arg5: memref<32x16xf32, #tpu.memory_space<vmem>>, %arg6: memref<48x128xf32, #tpu.memory_space<vmem>>, %arg7: memref<32x128xf32, #tpu.memory_space<vmem>>, %arg8: memref<32x128xf32, #tpu.memory_space<vmem>>) attributes {dimension_semantics = [#tpu.dimension_semantics<parallel>, #tpu.dimension_semantics<arbitrary>], iteration_bounds = array<i64: 1, 1>, scalar_prefetch = 0 : i64, scratch_operands = 1 : i64, tpu.core_type = #tpu.core_type<tc>, window_params = [{transform_indices = @transform_0, window_bounds = array<i64: 32, 32>}, {transform_indices = @transform_1, window_bounds = array<i64: 32, 32>}, {transform_indices = @transform_2, window_bounds = array<i64: 32, 16>}, {transform_indices = @transform_3, window_bounds = array<i64: 32, 16>}, {pipeline_mode = #tpu.pipeline_mode<synchronous>, transform_indices = @transform_4, window_bounds = array<i64: 48, 128>}, {transform_indices = @transform_5, window_bounds = array<i64: 32, 128>}]} {
    %c0_i32 = arith.constant 0 : i32
    %0 = arith.cmpi eq, %arg1, %c0_i32 : i32
    %1 = arith.extui %0 : i1 to i32
    %c0_i32_0 = arith.constant 0 : i32
    %2 = arith.cmpi ne, %1, %c0_i32_0 : i32
    scf.if %2 {
      %c0_19 = arith.constant 0 : index
      %c0_20 = arith.constant 0 : index
      %20 = vector.load %arg5[%c0_19, %c0_20] : memref<32x16xf32, #tpu.memory_space<vmem>>, vector<32x16xf32>
      %c0_21 = arith.constant 0 : index
      %c0_22 = arith.constant 0 : index
      %21 = vector.load %arg6[%c0_21, %c0_22] : memref<48x128xf32, #tpu.memory_space<vmem>>, vector<16x128xf32>
      %cst_23 = arith.constant dense<0.000000e+00> : vector<32x128xf32>
      %22 = tpu.matmul %20, %21, %cst_23 {dimension_numbers = #tpu.dot_dimension_numbers<[1], [0], [0], [1], [0, 0, 1, 1], [], []>} : vector<32x16xf32>, vector<16x128xf32>, vector<32x128xf32> -> vector<32x128xf32>
      %c0_24 = arith.constant 0 : index
      %c0_25 = arith.constant 0 : index
      %23 = vector.load %arg8[%c0_24, %c0_25] : memref<32x128xf32, #tpu.memory_space<vmem>>, vector<32x128xf32>
      tpu.vector_store %arg8[%c0_24, %c0_25], %22 {strides = array<i32>} : memref<32x128xf32, #tpu.memory_space<vmem>>, vector<32x128xf32>,
    } else {
    }
    %c0 = arith.constant 0 : index
    %c0_1 = arith.constant 0 : index
    %3 = vector.load %arg2[%c0, %c0_1] : memref<32x32xf32, #tpu.memory_space<vmem>>, vector<32x32xf32>
    %c0_2 = arith.constant 0 : index
    %c0_3 = arith.constant 0 : index
    %4 = vector.load %arg4[%c0_2, %c0_3] : memref<32x16xf32, #tpu.memory_space<vmem>>, vector<32x16xf32>
    %cst = arith.constant dense<0.000000e+00> : vector<32x16xf32>
    %5 = tpu.matmul %3, %4, %cst {dimension_numbers = #tpu.dot_dimension_numbers<[1], [0], [0], [1], [0, 0, 1, 1], [], []>} : vector<32x32xf32>, vector<32x16xf32>, vector<32x16xf32> -> vector<32x16xf32>
    %c0_4 = arith.constant 0 : index
    %c0_5 = arith.constant 0 : index
    %6 = vector.load %arg3[%c0_4, %c0_5] : memref<32x32xf32, #tpu.memory_space<vmem>>, vector<32x32xf32>
    %c0_6 = arith.constant 0 : index
    %c0_7 = arith.constant 0 : index
    %7 = vector.load %arg4[%c0_6, %c0_7] : memref<32x16xf32, #tpu.memory_space<vmem>>, vector<32x16xf32>
    %cst_8 = arith.constant dense<0.000000e+00> : vector<32x16xf32>
    %8 = tpu.matmul %6, %7, %cst_8 {dimension_numbers = #tpu.dot_dimension_numbers<[1], [0], [0], [1], [0, 0, 1, 1], [], []>} : vector<32x32xf32>, vector<32x16xf32>, vector<32x16xf32> -> vector<32x16xf32>
    %c0_9 = arith.constant 0 : index
    %c0_10 = arith.constant 0 : index
    %9 = vector.load %arg8[%c0_9, %c0_10] : memref<32x128xf32, #tpu.memory_space<vmem>>, vector<32x128xf32>
    %c16 = arith.constant 16 : index
    %c0_11 = arith.constant 0 : index
    %10 = vector.load %arg6[%c16, %c0_11] : memref<48x128xf32, #tpu.memory_space<vmem>>, vector<16x128xf32>
    %cst_12 = arith.constant dense<0.000000e+00> : vector<32x128xf32>
    %11 = tpu.matmul %5, %10, %cst_12 {dimension_numbers = #tpu.dot_dimension_numbers<[1], [0], [0], [1], [0, 0, 1, 1], [], []>} : vector<32x16xf32>, vector<16x128xf32>, vector<32x128xf32> -> vector<32x128xf32>
    %c32 = arith.constant 32 : index
    %c0_13 = arith.constant 0 : index
    %12 = vector.load %arg6[%c32, %c0_13] : memref<48x128xf32, #tpu.memory_space<vmem>>, vector<16x128xf32>
    %cst_14 = arith.constant dense<0.000000e+00> : vector<32x128xf32>
    %13 = tpu.matmul %8, %12, %cst_14 {dimension_numbers = #tpu.dot_dimension_numbers<[1], [0], [0], [1], [0, 0, 1, 1], [], []>} : vector<32x16xf32>, vector<16x128xf32>, vector<32x128xf32> -> vector<32x128xf32>
    %14 = arith.addf %11, %13 : vector<32x128xf32>
    %15 = arith.addf %9, %14 : vector<32x128xf32>
    %c0_15 = arith.constant 0 : index
    %c0_16 = arith.constant 0 : index
    %16 = vector.load %arg8[%c0_15, %c0_16] : memref<32x128xf32, #tpu.memory_space<vmem>>, vector<32x128xf32>
    tpu.vector_store %arg8[%c0_15, %c0_16], %15 {strides = array<i32>} : memref<32x128xf32, #tpu.memory_space<vmem>>, vector<32x128xf32>,
    %c0_i32_17 = arith.constant 0 : i32
    %17 = arith.cmpi eq, %arg1, %c0_i32_17 : i32
    %18 = arith.extui %17 : i1 to i32
    %c0_i32_18 = arith.constant 0 : i32
    %19 = arith.cmpi ne, %18, %c0_i32_18 : i32
    scf.if %19 {
      %c0_19 = arith.constant 0 : index
      %c0_20 = arith.constant 0 : index
      %20 = vector.load %arg8[%c0_19, %c0_20] : memref<32x128xf32, #tpu.memory_space<vmem>>, vector<32x128xf32>
      %cst_21 = arith.constant 0.000000e+00 : f32
      %21 = vector.broadcast %cst_21 : f32 to vector<32x128xf32>
      %22 = arith.cmpf oge, %20, %21 : vector<32x128xf32>
      %cst_22 = arith.constant 0.00999999977 : f32
      %23 = vector.broadcast %cst_22 : f32 to vector<32x128xf32>
      %24 = arith.mulf %23, %20 : vector<32x128xf32>
      %25 = arith.select %22, %20, %24 : vector<32x128xi1>, vector<32x128xf32>
      %c0_23 = arith.constant 0 : index
      %c0_24 = arith.constant 0 : index
      %26 = vector.load %arg7[%c0_23, %c0_24] : memref<32x128xf32, #tpu.memory_space<vmem>>, vector<32x128xf32>
      tpu.vector_store %arg7[%c0_23, %c0_24], %25 {strides = array<i32>} : memref<32x128xf32, #tpu.memory_space<vmem>>, vector<32x128xf32>,
    } else {
    }
    return
  }
  func.func @transform_0(%arg0: i32, %arg1: i32) -> (i32, i32) {
    %c0_i32 = arith.constant 0 : i32
    return %arg0, %arg1 : i32, i32
  }
  func.func @transform_1(%arg0: i32, %arg1: i32) -> (i32, i32) {
    %c0_i32 = arith.constant 0 : i32
    return %arg0, %arg1 : i32, i32
  }
  func.func @transform_2(%arg0: i32, %arg1: i32) -> (i32, i32) {
    %c0_i32 = arith.constant 0 : i32
    %c0_i32_0 = arith.constant 0 : i32
    return %arg1, %c0_i32 : i32, i32
  }
  func.func @transform_3(%arg0: i32, %arg1: i32) -> (i32, i32) {
    %c0_i32 = arith.constant 0 : i32
    %c0_i32_0 = arith.constant 0 : i32
    return %arg0, %c0_i32 : i32, i32
  }
  func.func @transform_4(%arg0: i32, %arg1: i32) -> (i32, i32) {
    %c0_i32 = arith.constant 0 : i32
    %c0_i32_0 = arith.constant 0 : i32
    %c0_i32_1 = arith.constant 0 : i32
    return %c0_i32, %c0_i32_0 : i32, i32
  }
  func.func @transform_5(%arg0: i32, %arg1: i32) -> (i32, i32) {
    %c0_i32 = arith.constant 0 : i32
    %c0_i32_0 = arith.constant 0 : i32
    return %arg0, %c0_i32 : i32, i32
  }
}

</mosaic_0001>

<bundles_post_ra>
// kernel: tpu_custom_call.1
= control target key start
LH: loop header
LB: loop body
LE: loop exit
PB: predicated region body
PF: predicated region fallthrough
CT: control target
= control target key end

     0   :  { %10 = vsyncpa [#allocation4], 0  ;;  %s885_s0 = inlined_call_operand.vmem [shape: f32[32,32], index: 0, kind: input, shape index: {}]   ;;  %s886_s1 = inlined_call_operand.hbm [shape: f32[32,32], index: 1, kind: input, shape index: {}]   ;;  %s887_s2 = inlined_call_operand.vmem [shape: f32[32,16], index: 2, kind: input, shape index: {}]   ;;  %s888_s3 = inlined_call_operand.vmem [shape: f32[32,16], index: 3, kind: input, shape index: {}]   ;;  %s889_s4 = inlined_call_operand.vmem [shape: f32[48,128], index: 4, kind: input, shape index: {}]   ;;  %s890_s5 = inlined_call_operand.hbm [shape: f32[32,128], index: 5, kind: output, shape index: {}]  }
   0x1   :  { %11 = vsyncpa [#allocation5], 0  ;;  %s765_s18 = smov [#allocation3]  }
   0x2   :  { %s19_s19 = sshll.u32 %s765_s18, 4  ;;  %s20_s19 = int_to_ptr.vmem [resolvable:$true] %s19_s19 }
   0x3   :  { %s729_s20 = scalar_lea.vmem %s20_s19, 512  ;;  %p734_p1 = scmp.lt.s32.totalorder %s20_s19, %s20_s19 }
   0x4   :  { %p730_p0 = scmp.ne.s32.totalorder %s20_s19, %s729_s20  ;;  %p735_p2 = scmp.lt.s32.totalorder %s729_s20, %s729_s20 }
   0x6   :  { %p736_p3 = por %p735_p2, %p734_p1 }
   0x8   :  { %p737_p4 = pnand %p736_p3, %p730_p0 }
   0xa   :  { %740 = shalt.err (!%p737_p4)
}
   0xb   :  { %s766_s21 = smov 128   ;;  %s767_s22 = smov 8  }
   0xc   :  { %25 = dma.hbm_to_vmem [thread:$0]  %s886_s1, 512, %s20_s19, [#allocation4], %s766_s21, %s766_s21, %s767_s22  }
   0xd   :  { %761 = dma.done.wait [#allocation4], 512  }
   0xe   :  { %762 = vsyncadd [#allocation4], 4294966784  ;;  %v44_v0 = vld [vmem:[%s889_s4 + $0x8] sm:$0xff]  ;;  %v154_v1 = vld [vmem:[%s887_s2 + $0x18] sm:$0xff]  ;;  %vm45_vm0 = vcmask 130048   ;;  %vm155_vm1 = vcmask 261120  }
   0xf   :  { %v43_v2 = vld [vmem:[%s889_s4] sm:$0xff]  ;;  %659 = vmatprep.subr.mxu0 %v44_v0  ;;  %669 = vmatprep.subr.mxu1 %v154_v1  ;;  %v153_v3 = vld [vmem:[%s887_s2 + $0x10] sm:$0xff]  ;;  %v40_v5 = vld [vmem:[%s888_s3 + $0x8] sm:$0xff] }
  0x10   :  { %v39_v4 = vld [vmem:[%s888_s3] sm:$0xff]  ;;  %660 = vmatpush3.msra.mxu0 %v44_v0  ;;  %670 = vmatpush3.msra.mxu1 %v154_v1  ;;  %v152_v6 = vld [vmem:[%s887_s2 + $0x8] sm:$0xff]  ;;  %v41_v8 = vld [vmem:[%s888_s3 + $0x10] sm:$0xff] }
  0x11   :  { %661 = vmatprep.subr.mxu0 %v43_v2  ;;  %671 = vmatprep.subr.mxu1 %v153_v3  ;;  %v151_v7 = vld [vmem:[%s887_s2] sm:$0xff]  ;;  %v42_v10 = vld [vmem:[%s888_s3 + $0x18] sm:$0xff]  ;;  %v148_v11 = vld [vmem:[%s885_s0 + $0x8] sm:$0xff] }
  0x12   :  { %662 = vmatpush3.msra.mxu0 %v43_v2  ;;  %663 = vmatprep.mubr.msk.f32.mxu0 %vm45_vm0, %v39_v4  ;;  %v147_v9 = vld [vmem:[%s885_s0] sm:$0xff]  ;;  %v149_v12 = vld [vmem:[%s885_s0 + $0x10] sm:$0xff]  ;;  %v150_v14 = vld [vmem:[%s885_s0 + $0x18] sm:$0xff] }
  0x13   :  { %672 = vmatpush3.msra.mxu1 %v153_v3  ;;  %664 = vmatmul.mubr.msk.f32.vlgmr.msra.gmra.mxu0 %vm45_vm0, %v40_v5  ;;  %v253_v13 = vld [vmem:[#allocation3] sm:$0xff]  ;;  %v254_v15 = vld [vmem:[#allocation3 + $0x8] sm:$0xff]  ;;  %v255_v16 = vld [vmem:[#allocation3 + $0x10] sm:$0xff] }
  0x14   :  { %673 = vmatprep.subr.mxu1 %v152_v6  ;;  %683 = vmatprep.subr.mxu0 %v154_v1  ;;  %v256_v17 = vld [vmem:[#allocation3 + $0x18] sm:$0xff]  ;;  %v361_v18 = vld [vmem:[%s889_s4 + $0x28] sm:$0xff]  ;;  %v358_v20 = vld [vmem:[%s889_s4 + $0x10] sm:$0xff] }
  0x15   :  { %674 = vmatpush3.msra.mxu1 %v152_v6  ;;  %684 = vmatpush3.msra.mxu0 %v154_v1  ;;  %v359_v19 = vld [vmem:[%s889_s4 + $0x18] sm:$0xff]  ;;  %v360_v21 = vld [vmem:[%s889_s4 + $0x20] sm:$0xff]  ;;  %s768_s4 = smov [#allocation6]  }
  0x16   :  { %675 = vmatprep.subr.mxu1 %v151_v7  ;;  %685 = vmatprep.subr.mxu0 %v153_v3  ;;  %s593_s8 = sshll.u32 %s768_s4, 4  ;;  %s594_s8 = int_to_ptr.vmem [resolvable:$true] %s593_s8 }
  0x17   :  { %666 = vmatprep.mubr.msk.f32.mxu0 %vm45_vm0, %v41_v8  ;;  %676 = vmatpush3.msra.mxu1 %v151_v7  ;;  %s741_s9 = scalar_lea.vmem %s594_s8, 512  ;;  %p746_p6 = scmp.lt.s32.totalorder %s594_s8, %s594_s8 }
  0x18   :  { %677 = vmatprep.mubr.msk.f32.mxu1 %vm155_vm1, %v147_v9  ;;  %686 = vmatpush3.msra.mxu0 %v153_v3  ;;  %p742_p5 = scmp.ne.s32.totalorder %s594_s8, %s741_s9  ;;  %p747_p7 = scmp.lt.s32.totalorder %s741_s9, %s741_s9 }
  0x19   :  { %667 = vmatmul.mubr.msk.f32.gmra.mxu0 %vm45_vm0, %v42_v10  ;;  %678 = vmatmul.mubr.msk.f32.vlgmr.msra.gmra.mxu1 %vm155_vm1, %v148_v11 }
  0x1a   :  { %687 = vmatprep.subr.mxu0 %v152_v6  ;;  %680 = vmatprep.mubr.msk.f32.mxu1 %vm155_vm1, %v149_v12  ;;  %p748_p8 = por %p747_p7, %p746_p6 }
  0x1b   :  { %688 = vmatpush3.msra.mxu0 %v152_v6  ;;  %691 = vmatprep.mubr.msk.f32.mxu0 %vm155_vm1, %v253_v13 }
  0x1c   :  { %689 = vmatprep.subr.mxu0 %v151_v7  ;;  %697 = vmatprep.subr.mxu1 %v361_v18  ;;  %p749_p9 = pnand %p748_p8, %p742_p5 }
  0x1d   :  { %690 = vmatpush3.msra.mxu0 %v151_v7  ;;  %681 = vmatmul.mubr.msk.f32.gmra.mxu1 %vm155_vm1, %v150_v14 }
  0x1e   :  { %692 = vmatmul.mubr.msk.f32.vlgmr.msra.gmra.mxu0 %vm155_vm1, %v254_v15  ;;  %707 = vmatprep.subr.mxu0 %v359_v19 }
  0x1f   :  { %694 = vmatprep.mubr.msk.f32.mxu0 %vm155_vm1, %v255_v16  ;;  %698 = vmatpush3.msra.mxu1 %v361_v18 }
  0x20   :  { %708 = vmatpush3.msra.mxu0 %v359_v19  ;;  %699 = vmatprep.subr.mxu1 %v360_v21 }
  0x21   :  { %709 = vmatprep.subr.mxu0 %v358_v20  ;;  %700 = vmatpush3.msra.mxu1 %v360_v21 }
  0x22   :  { %695 = vmatmul.mubr.msk.f32.gmra.mxu0 %vm155_vm1, %v256_v17 }
  0x23   :  { %710 = vmatpush3.msra.mxu0 %v358_v20 }
  0xd3   :  { %v665_v22 = vpop.f32.mrf.mxu0 }
  0xd5   :  { %v124_v23 = vpop.f32.mrf.mxu0 }
  0xd9   :  { %v668_v24 = vpop.f32.mrf.mxu0  ;;  %v679_v25 = vpop.f32.mrf.mxu1 }
  0xdb   :  { %v134_v26 = vpop.f32.mrf.mxu0  ;;  %v234_v27 = vpop.f32.mrf.mxu1 }
  0xdc   :  { %711 = vmatprep.mubr.msk.f32.mxu0 %vm45_vm0, %v234_v27 }
  0xdd   :  { %v682_v28 = vpop.f32.mrf.mxu1  ;;  %712 = vmatmul.mubr.msk.f32.vlgmr.msra.gmra.mxu0 %vm45_vm0, %v679_v25 }
  0xde   :  { %v693_v29 = vpop.f32.mrf.mxu0 }
  0xdf   :  { %v244_v30 = vpop.f32.mrf.mxu1 }
  0xe0   :  { %v335_v31 = vpop.f32.mrf.mxu0  ;;  %714 = vmatprep.mubr.msk.f32.mxu0 %vm45_vm0, %v244_v30 }
  0xe1   :  { %701 = vmatprep.mubr.msk.f32.mxu1 %vm45_vm0, %v335_v31  ;;  %715 = vmatmul.mubr.msk.f32.gmra.mxu0 %vm45_vm0, %v682_v28 }
  0xe2   :  { %v696_v32 = vpop.f32.mrf.mxu0  ;;  %702 = vmatmul.mubr.msk.f32.vlgmr.msra.gmra.mxu1 %vm45_vm0, %v693_v29 }
  0xe4   :  { %v345_v33 = vpop.f32.mrf.mxu0 }
  0xe5   :  { %704 = vmatprep.mubr.msk.f32.mxu1 %vm45_vm0, %v345_v33 }
  0xe6   :  { %705 = vmatmul.mubr.msk.f32.gmra.mxu1 %vm45_vm0, %v696_v32 }
 0x19d   :  { %v713_v34 = vpop.f32.mrf.mxu0 }
 0x19f   :  { %v538_v35 = vpop.f32.mrf.mxu0 }
 0x1a1   :  { %v716_v40 = vpop.f32.mrf.mxu0 }
 0x1a2   :  { %v703_v36 = vpop.f32.mrf.mxu1 }
 0x1a3   :  { %v544_v37 = vadd.f32 %v713_v34, %v703_v36  ;;  %v548_v49 = vpop.f32.mrf.mxu0 }
 0x1a4   :  { %v441_v38 = vpop.f32.mrf.mxu1 }
 0x1a5   :  { %v558_v39 = vadd.f32 %v665_v22, %v544_v37  ;;  %v539_v41 = vadd.f32 %v538_v35, %v441_v38 }
 0x1a6   :  { %v706_v42 = vpop.f32.mrf.mxu1 }
 0x1a7   :  { %vm573_vm2 = vcmp.ge.f32.partialorder %v558_v39, 0.0  ;;  %v577_v43 = vmul.f32 0.01, %v558_v39  ;;  %v557_v44 = vadd.f32 %v539_v41, %v124_v23  ;;  %v554_v45 = vadd.f32 %v716_v40, %v706_v42 }
 0x1a8   :  { %v451_v46 = vpop.f32.mrf.mxu1 }
 0x1a9   :  { %v581_v47 = vsel %vm573_vm2, %v558_v39, %v577_v43  ;;  %vm572_vm3 = vcmp.ge.f32.partialorder %v557_v44, 0.0  ;;  %v576_v48 = vmul.f32 0.01, %v557_v44  ;;  %v560_v50 = vadd.f32 %v668_v24, %v554_v45 }
 0x1aa   :  { %585 = vst [vmem:[#allocation6 + $0x8] sm:$0xff] %v581_v47  ;;  %v549_v51 = vadd.f32 %v548_v49, %v451_v46 }
 0x1ab   :  { %v580_v52 = vsel %vm572_vm3, %v557_v44, %v576_v48  ;;  %vm575_vm4 = vcmp.ge.f32.partialorder %v560_v50, 0.0  ;;  %v579_v53 = vmul.f32 0.01, %v560_v50 }
 0x1ac   :  { %584 = vst [vmem:[#allocation6] sm:$0xff] %v580_v52  ;;  %v559_v54 = vadd.f32 %v549_v51, %v134_v26 }
 0x1ad   :  { %v583_v55 = vsel %vm575_vm4, %v560_v50, %v579_v53 }
 0x1ae   :  { %587 = vst [vmem:[#allocation6 + $0x18] sm:$0xff] %v583_v55  ;;  %vm574_vm5 = vcmp.ge.f32.partialorder %v559_v54, 0.0  ;;  %v578_v56 = vmul.f32 0.01, %v559_v54 }
 0x1b0   :  { %v582_v57 = vsel %vm574_vm5, %v559_v54, %v578_v56 }
 0x1b1   :  { %586 = vst [vmem:[#allocation6 + $0x10] sm:$0xff] %v582_v57 }
 0x1b2   :  { %752 = shalt.err (!%p749_p9)
}
 0x1b3   :  { %599 = dma.vmem_to_hbm [thread:$0]  %s594_s8, 512, %s890_s5, [#allocation5], %s766_s21, %s766_s21, %s767_s22  }
 0x1b4   :  { %763 = dma.done.wait [#allocation5], 512  }
 0x1b5   :  { %764 = vsyncadd [#allocation5], 4294966784 }
 0x1b6   :  { %603 = vsyncpa [#allocation4], 1 }
 0x1b7   :  { %604 = vsyncpa [#allocation5], 1 }

</bundles_post_ra>
